<compile_context>
chip_gen: v7x
topology: tpu7x:2x2x1
jax: 0.10.0
libtpu: 0.0.40
codegen_flags: <defaults>
</compile_context>

<pallas_src>
import functools

import jax
import jax.numpy as jnp
import numpy as np
from jax.experimental import pallas as pl
from jax.experimental.pallas import tpu as pltpu


def _round_up(x, m):
    return ((x + m - 1) // m) * m


def _corr_kernel(x_ref, y_ref, o_ref,
                 sx_ref, sy_ref, sxx_ref, syy_ref, sxy_ref,
                 *, n_rows, eps):
    n_idx = pl.program_id(1)

    @pl.when(n_idx == 0)
    def _init():
        sx_ref[...] = jnp.zeros_like(sx_ref)
        sy_ref[...] = jnp.zeros_like(sy_ref)
        sxx_ref[...] = jnp.zeros_like(sxx_ref)
        syy_ref[...] = jnp.zeros_like(syy_ref)
        sxy_ref[...] = jnp.zeros_like(sxy_ref)

    # One cast per tile; always accumulate in float32 (never bf16 accum).
    x = x_ref[...].astype(jnp.float32)
    y = y_ref[...].astype(jnp.float32)

    tn, tf = x.shape
    xr = x.reshape(tn // 8, 8, tf)
    yr = y.reshape(tn // 8, 8, tf)

    # Per-sublane partial sums: VPU-only adds in the hot loop (no XLU
    # cross-sublane reduce per grid step).
    sx_ref[...] += jnp.sum(xr, axis=0)
    sy_ref[...] += jnp.sum(yr, axis=0)
    sxx_ref[...] += jnp.sum(xr * xr, axis=0)
    syy_ref[...] += jnp.sum(yr * yr, axis=0)
    sxy_ref[...] += jnp.sum(xr * yr, axis=0)

    @pl.when(n_idx == pl.num_programs(1) - 1)
    def _finalize():
        inv_n = jnp.float32(1.0 / n_rows)
        sx = jnp.sum(sx_ref[...], axis=0, keepdims=True)
        sy = jnp.sum(sy_ref[...], axis=0, keepdims=True)
        sxx = jnp.sum(sxx_ref[...], axis=0, keepdims=True)
        syy = jnp.sum(syy_ref[...], axis=0, keepdims=True)
        sxy = jnp.sum(sxy_ref[...], axis=0, keepdims=True)
        mean_x = sx * inv_n
        mean_y = sy * inv_n
        var_x = sxx * inv_n - mean_x * mean_x
        var_y = syy * inv_n - mean_y * mean_y
        cov = sxy - sx * mean_y                       # sum((x-mx)*(y-my))
        denom = jnp.sqrt((var_x + eps) * (var_y + eps))
        o_ref[...] = (cov / denom).astype(o_ref.dtype)


def unnormalized_corr(output, target, eps=1e-12, tile_n=1024, tile_f=512):
    """Pallas TPU equivalent of UnnormalizedCorr.forward. Returns (corrs, N)."""
    assert output.shape == target.shape and output.ndim == 2
    n, f = output.shape
    out_dtype = output.dtype

    # Lane-dense, (8,128)-aligned tiles (cap by the actual padded extents).
    tile_n = min(tile_n, _round_up(n, 8))
    tile_f = min(tile_f, _round_up(f, 128))
    n_pad = _round_up(n, tile_n)
    f_pad = _round_up(f, tile_f)

    if (n_pad, f_pad) != (n, f):
        output = jnp.pad(output, ((0, n_pad - n), (0, f_pad - f)))
        target = jnp.pad(target, ((0, n_pad - n), (0, f_pad - f)))

    grid = (f_pad // tile_f, n_pad // tile_n)  # reduction axis (N) last

    itemsize = jnp.dtype(output.dtype).itemsize
    cost = pl.CostEstimate(
        flops=8 * n_pad * f_pad,
        transcendentals=f_pad,
        bytes_accessed=2 * n_pad * f_pad * itemsize
        + f_pad * jnp.dtype(out_dtype).itemsize,
    )

    kernel = functools.partial(_corr_kernel, n_rows=n, eps=float(eps))

    corrs = pl.pallas_call(
        kernel,
        out_shape=jax.ShapeDtypeStruct((1, f_pad), out_dtype),
        grid_spec=pltpu.PrefetchScalarGridSpec(
            num_scalar_prefetch=0,
            grid=grid,
            in_specs=[
                pl.BlockSpec((tile_n, tile_f), lambda fi, ni: (ni, fi)),
                pl.BlockSpec((tile_n, tile_f), lambda fi, ni: (ni, fi)),
            ],
            # Same output block across all N steps -> accumulator stays
            # resident in VMEM; written only in the last-N epilogue.
            out_specs=pl.BlockSpec((1, tile_f), lambda fi, ni: (0, fi)),
            scratch_shapes=[pltpu.VMEM((8, tile_f), jnp.float32)] * 5,
        ),
        compiler_params=pltpu.CompilerParams(
            dimension_semantics=("parallel", "arbitrary"),
        ),
        cost_estimate=cost,
    )(output, target)

    # N is a static shape -> return it from the wrapper, not the kernel.
    return corrs[:, :f], n


def _reference(output, target, eps=1e-12):
    mx = jnp.mean(output, axis=0, keepdims=True)
    my = jnp.mean(target, axis=0, keepdims=True)
    dx = output - mx
    dy = target - my
    var_x = jnp.mean(dx * dx, axis=0, keepdims=True)
    var_y = jnp.mean(dy * dy, axis=0, keepdims=True)
    corrs = jnp.sum(dx * dy, axis=0, keepdims=True) / jnp.sqrt(
        (var_x + eps) * (var_y + eps))
    return corrs, output.shape[0]


if __name__ == "__main__":
    key = jax.random.PRNGKey(0)
    k1, k2 = jax.random.split(key)
    # Small 2-D (batch, features) inputs; F not a multiple of 128 to
    # exercise the padding path, N a multiple of 8.
    n, f = 64, 96
    x = jax.random.normal(k1, (n, f), dtype=jnp.float32)
    y = 0.5 * x + jax.random.normal(k2, (n, f), dtype=jnp.float32)

    corrs, n_out = unnormalized_corr(x, y)
    corrs = jax.block_until_ready(corrs)

    ref_corrs, ref_n = _reference(x, y)
    assert n_out == ref_n
    assert corrs.shape == (1, f)
    np.testing.assert_allclose(
        np.asarray(corrs), np.asarray(ref_corrs), rtol=1e-3, atol=1e-3)

    print("KERNEL_OK")
</pallas_src>

<mosaic_0001>
module attributes {stable_mosaic.version = 11 : i64} {
  func.func @_corr_kernel(%arg0: i32, %arg1: i32, %arg2: memref<64x128xf32, #tpu.memory_space<vmem>>, %arg3: memref<64x128xf32, #tpu.memory_space<vmem>>, %arg4: memref<1x128xf32, #tpu.memory_space<vmem>>, %arg5: memref<8x128xf32, #tpu.memory_space<vmem>>, %arg6: memref<8x128xf32, #tpu.memory_space<vmem>>, %arg7: memref<8x128xf32, #tpu.memory_space<vmem>>, %arg8: memref<8x128xf32, #tpu.memory_space<vmem>>, %arg9: memref<8x128xf32, #tpu.memory_space<vmem>>) attributes {dimension_semantics = [#tpu.dimension_semantics<parallel>, #tpu.dimension_semantics<arbitrary>], iteration_bounds = array<i64: 1, 1>, scalar_prefetch = 0 : i64, scratch_operands = 5 : i64, tpu.core_type = #tpu.core_type<tc>, window_params = [{transform_indices = @transform_0, window_bounds = array<i64: 64, 128>}, {transform_indices = @transform_1, window_bounds = array<i64: 64, 128>}, {transform_indices = @transform_2, window_bounds = array<i64: 1, 128>}]} {
    %c0_i32 = arith.constant 0 : i32
    %0 = arith.cmpi eq, %arg1, %c0_i32 : i32
    %1 = arith.extui %0 : i1 to i32
    %c0_i32_0 = arith.constant 0 : i32
    %2 = arith.cmpi ne, %1, %c0_i32_0 : i32
    scf.if %2 {
      %cst_30 = arith.constant 0.000000e+00 : f32
      %33 = vector.broadcast %cst_30 : f32 to vector<8x128xf32>
      %c0_31 = arith.constant 0 : index
      %c0_32 = arith.constant 0 : index
      %34 = vector.load %arg5[%c0_31, %c0_32] : memref<8x128xf32, #tpu.memory_space<vmem>>, vector<8x128xf32>
      tpu.vector_store %arg5[%c0_31, %c0_32], %33 {strides = array<i32>} : memref<8x128xf32, #tpu.memory_space<vmem>>, vector<8x128xf32>,
      %cst_33 = arith.constant 0.000000e+00 : f32
      %35 = vector.broadcast %cst_33 : f32 to vector<8x128xf32>
      %c0_34 = arith.constant 0 : index
      %c0_35 = arith.constant 0 : index
      %36 = vector.load %arg6[%c0_34, %c0_35] : memref<8x128xf32, #tpu.memory_space<vmem>>, vector<8x128xf32>
      tpu.vector_store %arg6[%c0_34, %c0_35], %35 {strides = array<i32>} : memref<8x128xf32, #tpu.memory_space<vmem>>, vector<8x128xf32>,
      %cst_36 = arith.constant 0.000000e+00 : f32
      %37 = vector.broadcast %cst_36 : f32 to vector<8x128xf32>
      %c0_37 = arith.constant 0 : index
      %c0_38 = arith.constant 0 : index
      %38 = vector.load %arg7[%c0_37, %c0_38] : memref<8x128xf32, #tpu.memory_space<vmem>>, vector<8x128xf32>
      tpu.vector_store %arg7[%c0_37, %c0_38], %37 {strides = array<i32>} : memref<8x128xf32, #tpu.memory_space<vmem>>, vector<8x128xf32>,
      %cst_39 = arith.constant 0.000000e+00 : f32
      %39 = vector.broadcast %cst_39 : f32 to vector<8x128xf32>
      %c0_40 = arith.constant 0 : index
      %c0_41 = arith.constant 0 : index
      %40 = vector.load %arg8[%c0_40, %c0_41] : memref<8x128xf32, #tpu.memory_space<vmem>>, vector<8x128xf32>
      tpu.vector_store %arg8[%c0_40, %c0_41], %39 {strides = array<i32>} : memref<8x128xf32, #tpu.memory_space<vmem>>, vector<8x128xf32>,
      %cst_42 = arith.constant 0.000000e+00 : f32
      %41 = vector.broadcast %cst_42 : f32 to vector<8x128xf32>
      %c0_43 = arith.constant 0 : index
      %c0_44 = arith.constant 0 : index
      %42 = vector.load %arg9[%c0_43, %c0_44] : memref<8x128xf32, #tpu.memory_space<vmem>>, vector<8x128xf32>
      tpu.vector_store %arg9[%c0_43, %c0_44], %41 {strides = array<i32>} : memref<8x128xf32, #tpu.memory_space<vmem>>, vector<8x128xf32>,
    } else {
    }
    %c0 = arith.constant 0 : index
    %c0_1 = arith.constant 0 : index
    %3 = vector.load %arg2[%c0, %c0_1] : memref<64x128xf32, #tpu.memory_space<vmem>>, vector<64x128xf32>
    %c0_2 = arith.constant 0 : index
    %c0_3 = arith.constant 0 : index
    %4 = vector.load %arg3[%c0_2, %c0_3] : memref<64x128xf32, #tpu.memory_space<vmem>>, vector<64x128xf32>
    %5 = vector.shape_cast %3 : vector<64x128xf32> to vector<8x8x128xf32>
    %6 = vector.shape_cast %4 : vector<64x128xf32> to vector<8x8x128xf32>
    %c0_4 = arith.constant 0 : index
    %c0_5 = arith.constant 0 : index
    %7 = vector.load %arg5[%c0_4, %c0_5] : memref<8x128xf32, #tpu.memory_space<vmem>>, vector<8x128xf32>
    %cst = arith.constant dense<0.000000e+00> : vector<8x128xf32>
    %8 = vector.multi_reduction <add>, %5, %cst [0] : vector<8x8x128xf32> to vector<8x128xf32>
    %9 = arith.addf %7, %8 : vector<8x128xf32>
    %c0_6 = arith.constant 0 : index
    %c0_7 = arith.constant 0 : index
    %10 = vector.load %arg5[%c0_6, %c0_7] : memref<8x128xf32, #tpu.memory_space<vmem>>, vector<8x128xf32>
    tpu.vector_store %arg5[%c0_6, %c0_7], %9 {strides = array<i32>} : memref<8x128xf32, #tpu.memory_space<vmem>>, vector<8x128xf32>,
    %c0_8 = arith.constant 0 : index
    %c0_9 = arith.constant 0 : index
    %11 = vector.load %arg6[%c0_8, %c0_9] : memref<8x128xf32, #tpu.memory_space<vmem>>, vector<8x128xf32>
    %cst_10 = arith.constant dense<0.000000e+00> : vector<8x128xf32>
    %12 = vector.multi_reduction <add>, %6, %cst_10 [0] : vector<8x8x128xf32> to vector<8x128xf32>
    %13 = arith.addf %11, %12 : vector<8x128xf32>
    %c0_11 = arith.constant 0 : index
    %c0_12 = arith.constant 0 : index
    %14 = vector.load %arg6[%c0_11, %c0_12] : memref<8x128xf32, #tpu.memory_space<vmem>>, vector<8x128xf32>
    tpu.vector_store %arg6[%c0_11, %c0_12], %13 {strides = array<i32>} : memref<8x128xf32, #tpu.memory_space<vmem>>, vector<8x128xf32>,
    %c0_13 = arith.constant 0 : index
    %c0_14 = arith.constant 0 : index
    %15 = vector.load %arg7[%c0_13, %c0_14] : memref<8x128xf32, #tpu.memory_space<vmem>>, vector<8x128xf32>
    %16 = arith.mulf %5, %5 : vector<8x8x128xf32>
    %cst_15 = arith.constant dense<0.000000e+00> : vector<8x128xf32>
    %17 = vector.multi_reduction <add>, %16, %cst_15 [0] : vector<8x8x128xf32> to vector<8x128xf32>
    %18 = arith.addf %15, %17 : vector<8x128xf32>
    %c0_16 = arith.constant 0 : index
    %c0_17 = arith.constant 0 : index
    %19 = vector.load %arg7[%c0_16, %c0_17] : memref<8x128xf32, #tpu.memory_space<vmem>>, vector<8x128xf32>
    tpu.vector_store %arg7[%c0_16, %c0_17], %18 {strides = array<i32>} : memref<8x128xf32, #tpu.memory_space<vmem>>, vector<8x128xf32>,
    %c0_18 = arith.constant 0 : index
    %c0_19 = arith.constant 0 : index
    %20 = vector.load %arg8[%c0_18, %c0_19] : memref<8x128xf32, #tpu.memory_space<vmem>>, vector<8x128xf32>
    %21 = arith.mulf %6, %6 : vector<8x8x128xf32>
    %cst_20 = arith.constant dense<0.000000e+00> : vector<8x128xf32>
    %22 = vector.multi_reduction <add>, %21, %cst_20 [0] : vector<8x8x128xf32> to vector<8x128xf32>
    %23 = arith.addf %20, %22 : vector<8x128xf32>
    %c0_21 = arith.constant 0 : index
    %c0_22 = arith.constant 0 : index
    %24 = vector.load %arg8[%c0_21, %c0_22] : memref<8x128xf32, #tpu.memory_space<vmem>>, vector<8x128xf32>
    tpu.vector_store %arg8[%c0_21, %c0_22], %23 {strides = array<i32>} : memref<8x128xf32, #tpu.memory_space<vmem>>, vector<8x128xf32>,
    %c0_23 = arith.constant 0 : index
    %c0_24 = arith.constant 0 : index
    %25 = vector.load %arg9[%c0_23, %c0_24] : memref<8x128xf32, #tpu.memory_space<vmem>>, vector<8x128xf32>
    %26 = arith.mulf %5, %6 : vector<8x8x128xf32>
    %cst_25 = arith.constant dense<0.000000e+00> : vector<8x128xf32>
    %27 = vector.multi_reduction <add>, %26, %cst_25 [0] : vector<8x8x128xf32> to vector<8x128xf32>
    %28 = arith.addf %25, %27 : vector<8x128xf32>
    %c0_26 = arith.constant 0 : index
    %c0_27 = arith.constant 0 : index
    %29 = vector.load %arg9[%c0_26, %c0_27] : memref<8x128xf32, #tpu.memory_space<vmem>>, vector<8x128xf32>
    tpu.vector_store %arg9[%c0_26, %c0_27], %28 {strides = array<i32>} : memref<8x128xf32, #tpu.memory_space<vmem>>, vector<8x128xf32>,
    %c0_i32_28 = arith.constant 0 : i32
    %30 = arith.cmpi eq, %arg1, %c0_i32_28 : i32
    %31 = arith.extui %30 : i1 to i32
    %c0_i32_29 = arith.constant 0 : i32
    %32 = arith.cmpi ne, %31, %c0_i32_29 : i32
    scf.if %32 {
      %c0_30 = arith.constant 0 : index
      %c0_31 = arith.constant 0 : index
      %33 = vector.load %arg5[%c0_30, %c0_31] : memref<8x128xf32, #tpu.memory_space<vmem>>, vector<8x128xf32>
      %cst_32 = arith.constant dense<0.000000e+00> : vector<128xf32>
      %34 = vector.multi_reduction <add>, %33, %cst_32 [0] : vector<8x128xf32> to vector<128xf32>
      %35 = vector.shape_cast %34 : vector<128xf32> to vector<1x128xf32>
      %c0_33 = arith.constant 0 : index
      %c0_34 = arith.constant 0 : index
      %36 = vector.load %arg6[%c0_33, %c0_34] : memref<8x128xf32, #tpu.memory_space<vmem>>, vector<8x128xf32>
      %cst_35 = arith.constant dense<0.000000e+00> : vector<128xf32>
      %37 = vector.multi_reduction <add>, %36, %cst_35 [0] : vector<8x128xf32> to vector<128xf32>
      %38 = vector.shape_cast %37 : vector<128xf32> to vector<1x128xf32>
      %c0_36 = arith.constant 0 : index
      %c0_37 = arith.constant 0 : index
      %39 = vector.load %arg7[%c0_36, %c0_37] : memref<8x128xf32, #tpu.memory_space<vmem>>, vector<8x128xf32>
      %cst_38 = arith.constant dense<0.000000e+00> : vector<128xf32>
      %40 = vector.multi_reduction <add>, %39, %cst_38 [0] : vector<8x128xf32> to vector<128xf32>
      %41 = vector.shape_cast %40 : vector<128xf32> to vector<1x128xf32>
      %c0_39 = arith.constant 0 : index
      %c0_40 = arith.constant 0 : index
      %42 = vector.load %arg8[%c0_39, %c0_40] : memref<8x128xf32, #tpu.memory_space<vmem>>, vector<8x128xf32>
      %cst_41 = arith.constant dense<0.000000e+00> : vector<128xf32>
      %43 = vector.multi_reduction <add>, %42, %cst_41 [0] : vector<8x128xf32> to vector<128xf32>
      %44 = vector.shape_cast %43 : vector<128xf32> to vector<1x128xf32>
      %c0_42 = arith.constant 0 : index
      %c0_43 = arith.constant 0 : index
      %45 = vector.load %arg9[%c0_42, %c0_43] : memref<8x128xf32, #tpu.memory_space<vmem>>, vector<8x128xf32>
      %cst_44 = arith.constant dense<0.000000e+00> : vector<128xf32>
      %46 = vector.multi_reduction <add>, %45, %cst_44 [0] : vector<8x128xf32> to vector<128xf32>
      %47 = vector.shape_cast %46 : vector<128xf32> to vector<1x128xf32>
      %cst_45 = arith.constant 1.562500e-02 : f32
      %48 = vector.broadcast %cst_45 : f32 to vector<1x128xf32>
      %49 = arith.mulf %35, %48 : vector<1x128xf32>
      %cst_46 = arith.constant 1.562500e-02 : f32
      %50 = vector.broadcast %cst_46 : f32 to vector<1x128xf32>
      %51 = arith.mulf %38, %50 : vector<1x128xf32>
      %cst_47 = arith.constant 1.562500e-02 : f32
      %52 = vector.broadcast %cst_47 : f32 to vector<1x128xf32>
      %53 = arith.mulf %41, %52 : vector<1x128xf32>
      %54 = arith.mulf %49, %49 : vector<1x128xf32>
      %55 = arith.subf %53, %54 : vector<1x128xf32>
      %cst_48 = arith.constant 1.562500e-02 : f32
      %56 = vector.broadcast %cst_48 : f32 to vector<1x128xf32>
      %57 = arith.mulf %44, %56 : vector<1x128xf32>
      %58 = arith.mulf %51, %51 : vector<1x128xf32>
      %59 = arith.subf %57, %58 : vector<1x128xf32>
      %60 = arith.mulf %35, %51 : vector<1x128xf32>
      %61 = arith.subf %47, %60 : vector<1x128xf32>
      %cst_49 = arith.constant 9.99999996E-13 : f32
      %62 = vector.broadcast %cst_49 : f32 to vector<1x128xf32>
      %63 = arith.addf %55, %62 : vector<1x128xf32>
      %cst_50 = arith.constant 9.99999996E-13 : f32
      %64 = vector.broadcast %cst_50 : f32 to vector<1x128xf32>
      %65 = arith.addf %59, %64 : vector<1x128xf32>
      %66 = arith.mulf %63, %65 : vector<1x128xf32>
      %67 = math.sqrt %66 : vector<1x128xf32>
      %68 = arith.divf %61, %67 : vector<1x128xf32>
      %c0_51 = arith.constant 0 : index
      %c0_52 = arith.constant 0 : index
      %69 = vector.load %arg4[%c0_51, %c0_52] : memref<1x128xf32, #tpu.memory_space<vmem>>, vector<1x128xf32>
      tpu.vector_store %arg4[%c0_51, %c0_52], %68 {strides = array<i32>} : memref<1x128xf32, #tpu.memory_space<vmem>>, vector<1x128xf32>,
    } else {
    }
    return
  }
  func.func @transform_0(%arg0: i32, %arg1: i32) -> (i32, i32) {
    %c0_i32 = arith.constant 0 : i32
    return %arg1, %arg0 : i32, i32
  }
  func.func @transform_1(%arg0: i32, %arg1: i32) -> (i32, i32) {
    %c0_i32 = arith.constant 0 : i32
    return %arg1, %arg0 : i32, i32
  }
  func.func @transform_2(%arg0: i32, %arg1: i32) -> (i32, i32) {
    %c0_i32 = arith.constant 0 : i32
    %c0_i32_0 = arith.constant 0 : i32
    return %c0_i32, %arg0 : i32, i32
  }
}

</mosaic_0001>

<bundles_post_ra>
// kernel: tpu_custom_call.1
= control target key start
LH: loop header
LB: loop body
LE: loop exit
PB: predicated region body
PF: predicated region fallthrough
CT: control target
= control target key end

     0   :  { %7 = vsyncpa [#allocation8], 0  ;;  %s371_s0 = inlined_call_operand.hbm [shape: f32[64,128], index: 0, kind: input, shape index: {}]   ;;  %s372_s1 = inlined_call_operand.hbm [shape: f32[64,128], index: 1, kind: input, shape index: {}]   ;;  %s373_s2 = inlined_call_operand.hbm [shape: f32[1,128], index: 2, kind: output, shape index: {}]  }
   0x1   :  { %8 = vsyncpa [#allocation11], 0 }
   0x2   :  { %9 = vsyncpa [#allocation9], 0  ;;  %s297_s9 = smov [#allocation7]   ;;  %s225_s13 = scalar_lea.hbm %s371_s0, 1024 }
   0x3   :  { %s15_s10 = sshll.u32 %s297_s9, 4  ;;  %p226_p0 = scmp.ne.s32.totalorder %s371_s0, %s225_s13  ;;  %s16_s10 = int_to_ptr.vmem [resolvable:$true] %s15_s10 }
   0x4   :  { %p229_p1 = scmp.lt.u32.totalorder %s225_s13, %s371_s0 }
   0x6   :  { %p231_p2 = pnand %p229_p1, %p226_p0 }
   0x8   :  { %234 = shalt.err (!%p231_p2)
}
   0x9   :  { %s235_s18 = scalar_lea.vmem %s16_s10, 1024  ;;  %p240_p4 = scmp.lt.s32.totalorder %s16_s10, %s16_s10 }
   0xa   :  { %p236_p3 = scmp.ne.s32.totalorder %s16_s10, %s235_s18  ;;  %p241_p5 = scmp.lt.s32.totalorder %s235_s18, %s235_s18 }
   0xc   :  { %p242_p6 = por %p241_p5, %p240_p4 }
   0xe   :  { %p243_p7 = pnand %p242_p6, %p236_p3 }
  0x10   :  { %246 = shalt.err (!%p243_p7)
}
  0x11   :  { %s298_s19 = smov 128   ;;  %s299_s20 = smov 8  }
  0x12   :  { %21 = dma.hbm_to_vmem [thread:$0]  %s371_s0, 1024, %s16_s10, [#allocation8], %s298_s19, %s298_s19, %s299_s20  }
  0x13   :  { %s300_s23 = smov [#allocation10]   ;;  %s247_s27 = scalar_lea.hbm %s372_s1, 1024 }
  0x14   :  { %s27_s24 = sshll.u32 %s300_s23, 4  ;;  %p248_p8 = scmp.ne.s32.totalorder %s372_s1, %s247_s27  ;;  %s28_s24 = int_to_ptr.vmem [resolvable:$true] %s27_s24 }
  0x15   :  { %p251_p9 = scmp.lt.u32.totalorder %s247_s27, %s372_s1 }
  0x17   :  { %p253_p10 = pnand %p251_p9, %p248_p8 }
  0x19   :  { %256 = shalt.err (!%p253_p10)
}
  0x1a   :  { %s257_s4 = scalar_lea.vmem %s28_s24, 1024  ;;  %p262_p12 = scmp.lt.s32.totalorder %s28_s24, %s28_s24 }
  0x1b   :  { %p258_p11 = scmp.ne.s32.totalorder %s28_s24, %s257_s4  ;;  %p263_p13 = scmp.lt.s32.totalorder %s257_s4, %s257_s4 }
  0x1d   :  { %p264_p0 = por %p263_p13, %p262_p12 }
  0x1f   :  { %p265_p1 = pnand %p264_p0, %p258_p11 }
  0x21   :  { %268 = shalt.err (!%p265_p1)
}
  0x22   :  { %33 = dma.hbm_to_vmem [thread:$0]  %s372_s1, 1024, %s28_s24, [#allocation11], %s298_s19, %s298_s19, %s299_s20  }
  0x23   :  { %291 = dma.done.wait [#allocation8], 1024  }
  0x24   :  { %292 = vsyncadd [#allocation8], 4294966272 }
  0x25   :  { %293 = dma.done.wait [#allocation11], 1024  }
  0x26   :  { %294 = vsyncadd [#allocation11], 4294966272  ;;  %v49_v0 = vld [vmem:[#allocation7] sm:$0xff]  ;;  %v50_v1 = vld [vmem:[#allocation7 + $0x8] sm:$0xff]  ;;  %s301_s1 = smov [#allocation12]  }
  0x27   :  { %v51_v2 = vld [vmem:[#allocation7 + $0x10] sm:$0xff]  ;;  %v52_v3 = vld [vmem:[#allocation7 + $0x18] sm:$0xff]  ;;  %v66_v4 = vadd.f32 %v50_v1, %v49_v0  ;;  %v86_v5 = vmul.f32 %v49_v0, %v49_v0  ;;  %v87_v6 = vmul.f32 %v50_v1, %v50_v1  ;;  %v53_v8 = vld [vmem:[#allocation7 + $0x20] sm:$0xff]  ;;  %s206_s6 = sshll.u32 %s301_s1, 4  ;;  %s207_s6 = int_to_ptr.vmem [resolvable:$true] %s206_s6 }
  0x28   :  { %v88_v7 = vmul.f32 %v51_v2, %v51_v2  ;;  %v341_v9 = vld [vmem:[#allocation7 + $0x28] sm:$0xff]  ;;  %v57_v10 = vld [vmem:[#allocation10] sm:$0xff]  ;;  %v59_v12 = vld [vmem:[#allocation10 + $0x10] sm:$0xff]  ;;  %v89_v15 = vmul.f32 %v52_v3, %v52_v3  ;;  %v90_v22 = vmul.f32 %v53_v8, %v53_v8  ;;  %s269_s7 = scalar_lea.vmem %s207_s6, 16  ;;  %s273_s8 = scalar_lea.vmem %s207_s6, 32 }
  0x29   :  { %v58_v11 = vld [vmem:[#allocation10 + $0x8] sm:$0xff]  ;;  %v60_v13 = vld [vmem:[#allocation10 + $0x18] sm:$0xff]  ;;  %v67_v14 = vadd.f32 %v66_v4, %v51_v2  ;;  %v94_v16 = vadd.f32 %v87_v6, %v86_v5  ;;  %v104_v18 = vmul.f32 %v57_v10, %v57_v10  ;;  %v343_v20 = vld [vmem:[#allocation7 + $0x30] sm:$0xff]  ;;  %v106_v24 = vmul.f32 %v59_v12, %v59_v12  ;;  %p270_p2 = scmp.ne.s32.totalorder %s207_s6, %s269_s7  ;;  %p274_p3 = scmp.lt.s32.totalorder %s207_s6, %s207_s6 }
  0x2a   :  { %v76_v17 = vadd.f32 %v58_v11, %v57_v10  ;;  %v105_v19 = vmul.f32 %v58_v11, %v58_v11  ;;  %v61_v25 = vld [vmem:[#allocation10 + $0x20] sm:$0xff]  ;;  %v91_v27 = vmul.f32 %v341_v9, %v341_v9  ;;  %v107_v28 = vmul.f32 %v60_v13, %v60_v13  ;;  %v347_v29 = vld [vmem:[#allocation7 + $0x38] sm:$0xff]  ;;  %v62_v30 = vld [vmem:[#allocation10 + $0x28] sm:$0xff]  ;;  %p275_p4 = scmp.lt.s32.totalorder %s273_s8, %s269_s7 }
  0x2b   :  { %v68_v21 = vadd.f32 %v67_v14, %v52_v3  ;;  %v95_v23 = vadd.f32 %v94_v16, %v88_v7  ;;  %v122_v34 = vmul.f32 %v57_v10, %v49_v0  ;;  %v92_v36 = vmul.f32 %v343_v20, %v343_v20  ;;  %v63_v42 = vld [vmem:[#allocation10 + $0x30] sm:$0xff]  ;;  %v64_v47 = vld [vmem:[#allocation10 + $0x38] sm:$0xff] }
  0x2c   :  { %v77_v26 = vadd.f32 %v76_v17, %v59_v12  ;;  %v112_v33 = vadd.f32 %v105_v19, %v104_v18  ;;  %v123_v37 = vmul.f32 %v58_v11, %v50_v1  ;;  %v108_v40 = vmul.f32 %v61_v25, %v61_v25  ;;  %p276_p5 = por %p275_p4, %p274_p3 }
  0x2d   :  { %v69_v31 = vadd.f32 %v68_v21, %v53_v8  ;;  %v96_v32 = vadd.f32 %v95_v23, %v89_v15  ;;  %v93_v44 = vmul.f32 %v347_v29, %v347_v29  ;;  %v109_v45 = vmul.f32 %v62_v30, %v62_v30 }
  0x2e   :  { %v78_v35 = vadd.f32 %v77_v26, %v60_v13  ;;  %v113_v41 = vadd.f32 %v112_v33, %v106_v24  ;;  %v124_v46 = vmul.f32 %v59_v12, %v51_v2  ;;  %v130_v51 = vadd.f32 %v123_v37, %v122_v34  ;;  %p277_p6 = pnand %p276_p5, %p270_p2 }
  0x2f   :  { %v70_v38 = vadd.f32 %v69_v31, %v341_v9  ;;  %v97_v39 = vadd.f32 %v96_v32, %v90_v22  ;;  %v110_v55 = vmul.f32 %v63_v42, %v63_v42  ;;  %v111_v58 = vmul.f32 %v64_v47, %v64_v47 }
  0x30   :  { %v79_v43 = vadd.f32 %v78_v35, %v61_v25  ;;  %v114_v50 = vadd.f32 %v113_v41, %v107_v28  ;;  %v125_v59 = vmul.f32 %v60_v13, %v52_v3  ;;  %v131_v62 = vadd.f32 %v130_v51, %v124_v46 }
  0x31   :  { %v71_v48 = vadd.f32 %v70_v38, %v343_v20  ;;  %v98_v49 = vadd.f32 %v97_v39, %v91_v27  ;;  %v126_v5 = vmul.f32 %v61_v25, %v53_v8  ;;  %v127_v3 = vmul.f32 %v62_v30, %v341_v9 }
  0x32   :  { %v80_v52 = vadd.f32 %v79_v43, %v62_v30  ;;  %v115_v56 = vadd.f32 %v114_v50, %v108_v40  ;;  %v132_v10 = vadd.f32 %v131_v62, %v125_v59  ;;  %v128_v25 = vmul.f32 %v63_v42, %v343_v20 }
  0x33   :  { %v72_v53 = vadd.f32 %v71_v48, %v347_v29  ;;  %v99_v54 = vadd.f32 %v98_v49, %v92_v36  ;;  %v129_v37 = vmul.f32 %v64_v47, %v347_v29 }
  0x34   :  { %v81_v57 = vadd.f32 %v80_v52, %v63_v42  ;;  %v116_v61 = vadd.f32 %v115_v56, %v109_v45  ;;  %v133_v18 = vadd.f32 %v132_v10, %v126_v5 }
  0x35   :  { %v100_v60 = vadd.f32 %v99_v54, %v93_v44  ;;  %v143_v63 = vrot.slane %v72_v53, 4 }
  0x36   :  { %v82_v0 = vadd.f32 %v81_v57, %v64_v47  ;;  %v117_v1 = vadd.f32 %v116_v61, %v110_v55  ;;  %v134_v28 = vadd.f32 %v133_v18, %v127_v3 }
  0x37   :  { %v144_v2 = vadd.f32 %v143_v63, %v72_v53  ;;  %v157_v4 = vrot.slane %v100_v60, 4 }
  0x38   :  { %v150_v6 = vrot.slane %v82_v0, 4  ;;  %v118_v7 = vadd.f32 %v117_v1, %v111_v58  ;;  %v135_v38 = vadd.f32 %v134_v28, %v128_v25 }
  0x39   :  { %v145_v11 = vrot.slane %v144_v2, 2  ;;  %v158_v12 = vadd.f32 %v157_v4, %v100_v60 }
  0x3a   :  { %v151_v14 = vadd.f32 %v150_v6, %v82_v0  ;;  %v164_v17 = vrot.slane %v118_v7, 4  ;;  %v136_v44 = vadd.f32 %v135_v38, %v129_v37 }
  0x3b   :  { %v146_v15 = vadd.f32 %v145_v11, %v144_v2  ;;  %v159_v16 = vrot.slane %v158_v12, 2 }
  0x3c   :  { %v152_v13 = vrot.slane %v151_v14, 2  ;;  %v165_v22 = vadd.f32 %v164_v17, %v118_v7  ;;  %v171_v46 = vrot.slane %v136_v44, 4 }
  0x3d   :  { %v147_v19 = vrot.slane %v146_v15, 1  ;;  %v160_v21 = vadd.f32 %v159_v16, %v158_v12 }
  0x3e   :  { %v153_v23 = vadd.f32 %v152_v13, %v151_v14  ;;  %v166_v8 = vrot.slane %v165_v22, 2  ;;  %v172_v49 = vadd.f32 %v171_v46, %v136_v44 }
  0x3f   :  { %v148_v24 = vadd.f32 %v147_v19, %v146_v15  ;;  %v161_v26 = vrot.slane %v160_v21, 1 }
  0x40   :  { %v154_v27 = vrot.slane %v153_v23, 1  ;;  %v167_v32 = vadd.f32 %v166_v8, %v165_v22  ;;  %v173_v50 = vrot.slane %v172_v49, 2 }
  0x41   :  { %v162_v31 = vadd.f32 %v161_v26, %v160_v21  ;;  %v177_v33 = vmul.f32 0.015625, %v148_v24 }
  0x42   :  { %v155_v34 = vadd.f32 %v154_v27, %v153_v23  ;;  %v168_v35 = vrot.slane %v167_v32, 1  ;;  %v174_v52 = vadd.f32 %v173_v50, %v172_v49 }
  0x43   :  { %v179_v36 = vmul.f32 0.015625, %v162_v31  ;;  %v180_v9 = vmul.f32 %v177_v33, %v177_v33 }
  0x44   :  { %v178_v30 = vmul.f32 0.015625, %v155_v34  ;;  %v169_v39 = vadd.f32 %v168_v35, %v167_v32  ;;  %v175_v47 = vrot.slane %v174_v52, 1 }
  0x45   :  { %v181_v40 = vsub.f32 %v179_v36, %v180_v9 }
  0x46   :  { %v183_v41 = vmul.f32 %v178_v30, %v178_v30  ;;  %v182_v43 = vmul.f32 0.015625, %v169_v39  ;;  %v176_v56 = vadd.f32 %v175_v47, %v174_v52  ;;  %v185_v57 = vmul.f32 %v178_v30, %v148_v24 }
  0x47   :  { %v187_v20 = vadd.f32 1e-12, %v181_v40 }
  0x48   :  { %v184_v45 = vsub.f32 %v182_v43, %v183_v41  ;;  %v186_v58 = vsub.f32 %v176_v56, %v185_v57 }
  0x4a   :  { %v188_v42 = vadd.f32 1e-12, %v184_v45 }
  0x4c   :  { %v189_v48 = vmul.f32 %v188_v42, %v187_v20 }
  0x4e   :  { %221 = vrsqrt.f32 %v189_v48  ;;  %vm192_vm0 = vcmp.eq.f32.partialorder %v189_v48, inf  ;;  %v195_v53 = vand.u32 2147483648, %v189_v48  ;;  %vm194_vm1 = vcmp.eq.f32.partialorder %v189_v48, 0.0 }
  0x58   :  { %v222_v51 = vpop.eup %221 }
  0x59   :  { %v191_v54 = vmul.f32 %v222_v51, %v189_v48 }
  0x5b   :  { %v193_v29 = vsel %vm192_vm0, %v189_v48, %v191_v54 }
  0x5c   :  { %v196_v55 = vsel %vm194_vm1, %v195_v53, %v193_v29 }
  0x5d   :  { %223 = vrcp.f32 %v196_v55 }
  0x67   :  { %v224_v59 = vpop.eup %223 }
  0x68   :  { %v198_v60 = vmul.f32 %v224_v59, %v186_v58 }
  0x6a   :  { %199 = vst [vmem:[#allocation12] sm:$0x1] %v198_v60 }
  0x6b   :  { %280 = shalt.err (!%p277_p6)
}
  0x6c   :  { %s281_s11 = scalar_lea.hbm %s373_s2, 16 }
  0x6d   :  { %p282_p7 = scmp.ne.s32.totalorder %s373_s2, %s281_s11  ;;  %p285_p8 = scmp.lt.u32.totalorder %s281_s11, %s373_s2 }
  0x6f   :  { %p287_p9 = pnand %p285_p8, %p282_p7 }
  0x71   :  { %290 = shalt.err (!%p287_p9)
}
  0x72   :  { %209 = dma.vmem_to_hbm [thread:$0]  %s207_s6, 16, %s373_s2, [#allocation9]  }
  0x73   :  { %295 = dma.done.wait [#allocation9], 16  }
  0x74   :  { %296 = vsyncadd [#allocation9], 4294967280 }
  0x75   :  { %213 = vsyncpa [#allocation8], 1 }
  0x76   :  { %214 = vsyncpa [#allocation11], 1 }
  0x77   :  { %215 = vsyncpa [#allocation9], 1 }

</bundles_post_ra>
